<compile_context>
chip_gen: v6e
topology: v6e:2x2x1
jax: 0.10.0
libtpu: 0.0.40
codegen_flags: <defaults>
</compile_context>

<pallas_src>
import functools

import jax
import jax.numpy as jnp
from jax.experimental import pallas as pl
from jax.experimental.pallas import tpu as pltpu

# Per-input VMEM block budget in lane-padded bytes.  2 MiB keeps the worst
# case (2 inputs x 2 pipeline buffers + a few f32-sized value temporaries when
# inputs are bf16) around ~20 MiB, safe under v7x's 32 MiB scoped / 64 MiB
# physical VMEM.  On v5e/v6e (128 MiB physical) this could be raised to
# 4-6 MiB for slightly better per-step overhead amortization.
_BLOCK_BYTES = 2 * 1024 * 1024
_MAX_TILE_COLS = 2048                 # column-tile width for very wide last dims
_VMEM_LIMIT_BYTES = 30 * 1024 * 1024  # explicit scoped-VMEM limit (all chips)


def _mse_sum_kernel(p_ref, t_ref, o_ref, acc_ref, *, tile_rows, tile_cols,
                    rows, cols, needs_row_mask, needs_col_mask):
    i = pl.program_id(0)              # row-tile index ("arbitrary" reduction)
    j = pl.program_id(1)              # col-tile index ("arbitrary" reduction)
    last_i = pl.num_programs(0) - 1
    last_j = pl.num_programs(1) - 1

    @pl.when((i == 0) & (j == 0))
    def _init():
        acc_ref[...] = jnp.zeros_like(acc_ref)   # tiny (8, tile_cols) acc

    # Hot path: stream native dtype, cast in-register, (p - t)^2.
    d = p_ref[...].astype(jnp.float32) - t_ref[...].astype(jnp.float32)
    sq = d * d

    def _row_group_sum(x):
        # (tile_rows, tile_cols) -> (8, tile_cols): VPU adds across 8-row
        # groups (layout-compatible reshape; no XLU work in the hot loop).
        return x.reshape(tile_rows // 8, 8, tile_cols).sum(axis=0)

    if needs_row_mask or needs_col_mask:
        # Only tail/OOB tiles pay for iota + compare + select.
        conds = []
        if needs_row_mask:
            conds.append(i == last_i)
        if needs_col_mask:
            conds.append(j == last_j)
        is_tail = conds[0]
        for c in conds[1:]:
            is_tail = jnp.logical_or(is_tail, c)

        @pl.when(is_tail)
        def _tail():
            ok = None
            if needs_row_mask:
                row_ids = i * tile_rows + jax.lax.broadcasted_iota(
                    jnp.int32, sq.shape, 0)
                ok = row_ids < rows
            if needs_col_mask:
                col_ids = j * tile_cols + jax.lax.broadcasted_iota(
                    jnp.int32, sq.shape, 1)
                col_ok = col_ids < cols
                ok = col_ok if ok is None else jnp.logical_and(ok, col_ok)
            acc_ref[...] += _row_group_sum(jnp.where(ok, sq, 0.0))

        @pl.when(jnp.logical_not(is_tail))
        def _steady():
            acc_ref[...] += _row_group_sum(sq)
    else:
        acc_ref[...] += _row_group_sum(sq)

    @pl.when((i == last_i) & (j == last_j))
    def _finalize():
        # Single XLU reduce of the small accumulator, written once at the end
        # into a lane-dense (8, 128) output slab.
        o_ref[...] = jnp.full(o_ref.shape, jnp.sum(acc_ref[...]), jnp.float32)


def _sum_sq_diff(pred2d, targ2d, tile_rows=None, tile_cols=None):
    rows, cols = pred2d.shape
    itemsize = max(pred2d.dtype.itemsize, targ2d.dtype.itemsize)
    rows_up = ((rows + 7) // 8) * 8
    padded_cols_full = ((cols + 127) // 128) * 128

    # Column tiling only when the full last dim cannot fit a block with at
    # least 8 rows inside the budget (very wide last dims / 1-D inputs);
    # otherwise the block spans the full last dim (no col mask, fewer tiles).
    if tile_cols is None:
        if padded_cols_full * itemsize * 8 <= _BLOCK_BYTES:
            tile_cols = cols
        else:
            tile_cols = _MAX_TILE_COLS
    else:
        tile_cols = min(tile_cols, cols)
        if tile_cols != cols:
            tile_cols = max(128, (tile_cols // 128) * 128)  # (8,128) rule
    padded_tile_cols = ((tile_cols + 127) // 128) * 128

    # Byte-based row budget on lane-padded cols and the native input dtype.
    if tile_rows is None:
        tile_rows = _BLOCK_BYTES // (padded_tile_cols * itemsize)
    tile_rows = max(8, (tile_rows // 8) * 8)
    tile_rows = min(tile_rows, rows_up)

    nrt = pl.cdiv(rows, tile_rows)
    nct = pl.cdiv(cols, tile_cols)
    needs_row_mask = (rows % tile_rows) != 0
    needs_col_mask = (cols % tile_cols) != 0

    kernel = functools.partial(
        _mse_sum_kernel,
        tile_rows=tile_rows, tile_cols=tile_cols,
        rows=rows, cols=cols,
        needs_row_mask=needs_row_mask, needs_col_mask=needs_col_mask)

    partial = pl.pallas_call(
        kernel,
        out_shape=jax.ShapeDtypeStruct((8, 128), jnp.float32),
        grid_spec=pltpu.PrefetchScalarGridSpec(
            num_scalar_prefetch=0,
            grid=(nrt, nct),
            in_specs=[
                pl.BlockSpec((tile_rows, tile_cols), lambda i, j: (i, j)),
                pl.BlockSpec((tile_rows, tile_cols), lambda i, j: (i, j)),
            ],
            out_specs=pl.BlockSpec((8, 128), lambda i, j: (0, 0)),
            scratch_shapes=[pltpu.VMEM((8, tile_cols), jnp.float32)],
        ),
        compiler_params=pltpu.CompilerParams(
            dimension_semantics=("arbitrary", "arbitrary"),
            vmem_limit_bytes=_VMEM_LIMIT_BYTES,
        ),
    )(pred2d, targ2d)

    return partial[0, 0]


def phos_loss(pred, target, *, _tile_rows=None, _tile_cols=None):
    """MSE loss (mean reduction) between pred and target, any matching shape.

    Returns float32 (intentional: stable accumulation for a scalar loss)."""
    assert pred.shape == target.shape
    n = pred.size
    # Metadata-only 2-D view: (prod(leading dims), last_dim). No padding or
    # dtype cast in the wrapper -- the kernel streams native dtype from HBM.
    if pred.ndim >= 2:
        cols = pred.shape[-1]
        rows = n // cols
    else:
        rows, cols = 1, max(n, 1)
    p2 = pred.reshape(rows, cols)
    t2 = target.reshape(rows, cols)

    ssq = _sum_sq_diff(p2, t2, tile_rows=_tile_rows, tile_cols=_tile_cols)
    return ssq / jnp.float32(n)


if __name__ == "__main__":
    key = jax.random.PRNGKey(0)
    k = jax.random.split(key, 10)

    # 1) Phos prediction head: batch=8, phos-dim=165 (last dim not a multiple
    #    of 128; single grid step, no masks).
    pred = jax.random.normal(k[0], (8, 165), dtype=jnp.float32)
    target = jax.random.normal(k[1], (8, 165), dtype=jnp.float32)
    loss = jax.block_until_ready(phos_loss(pred, target))
    ref = jnp.mean((pred - target) ** 2)
    assert jnp.allclose(loss, ref, rtol=1e-5, atol=1e-6), (loss, ref)

    # 2) Native-dtype streaming + ragged row tail (masked tail tile, bf16).
    pred_b = jax.random.normal(k[2], (13, 165), dtype=jnp.bfloat16)
    targ_b = jax.random.normal(k[3], (13, 165), dtype=jnp.bfloat16)
    loss_b = jax.block_until_ready(phos_loss(pred_b, targ_b))
    ref_b = jnp.mean((pred_b.astype(jnp.float32) - targ_b.astype(jnp.float32)) ** 2)
    assert jnp.allclose(loss_b, ref_b, rtol=1e-5, atol=1e-6), (loss_b, ref_b)

    # 3) Multi-row-tile path with forced small tile: grid (3, 1), ragged tail
    #    masked only on the last row tile (steady-state tiles unmasked).
    pred_c = jax.random.normal(k[4], (40, 165), dtype=jnp.float32)
    targ_c = jax.random.normal(k[5], (40, 165), dtype=jnp.float32)
    loss_c = jax.block_until_ready(phos_loss(pred_c, targ_c, _tile_rows=16))
    ref_c = jnp.mean((pred_c - targ_c) ** 2)
    assert jnp.allclose(loss_c, ref_c, rtol=1e-5, atol=1e-6), (loss_c, ref_c)

    # 4) Row + column tiling with ragged tails on both axes: grid (2, 3).
    pred_d = jax.random.normal(k[6], (20, 300), dtype=jnp.float32)
    targ_d = jax.random.normal(k[7], (20, 300), dtype=jnp.float32)
    loss_d = jax.block_until_ready(
        phos_loss(pred_d, targ_d, _tile_rows=16, _tile_cols=128))
    ref_d = jnp.mean((pred_d - targ_d) ** 2)
    assert jnp.allclose(loss_d, ref_d, rtol=1e-5, atol=1e-6), (loss_d, ref_d)

    # 5) 1-D input (rows=1 view, masked padding rows).
    pred_e = jax.random.normal(k[8], (165,), dtype=jnp.float32)
    targ_e = jax.random.normal(k[9], (165,), dtype=jnp.float32)
    loss_e = jax.block_until_ready(phos_loss(pred_e, targ_e))
    ref_e = jnp.mean((pred_e - targ_e) ** 2)
    assert jnp.allclose(loss_e, ref_e, rtol=1e-5, atol=1e-6), (loss_e, ref_e)

    print("KERNEL_OK")
</pallas_src>

<mosaic_0001>
module attributes {stable_mosaic.version = 11 : i64} {
  func.func @_mse_sum_kernel(%arg0: i32, %arg1: i32, %arg2: memref<8x165xf32, #tpu.memory_space<vmem>>, %arg3: memref<8x165xf32, #tpu.memory_space<vmem>>, %arg4: memref<8x128xf32, #tpu.memory_space<vmem>>, %arg5: memref<8x165xf32, #tpu.memory_space<vmem>>) attributes {dimension_semantics = [#tpu.dimension_semantics<arbitrary>, #tpu.dimension_semantics<arbitrary>], iteration_bounds = array<i64: 1, 1>, scalar_prefetch = 0 : i64, scratch_operands = 1 : i64, tpu.core_type = #tpu.core_type<tc>, window_params = [{transform_indices = @transform_0, window_bounds = array<i64: 8, 165>}, {transform_indices = @transform_1, window_bounds = array<i64: 8, 165>}, {pipeline_mode = #tpu.pipeline_mode<synchronous>, transform_indices = @transform_2, window_bounds = array<i64: 8, 128>}]} {
    %c0_i32 = arith.constant 0 : i32
    %0 = arith.cmpi eq, %arg0, %c0_i32 : i32
    %c0_i32_0 = arith.constant 0 : i32
    %1 = arith.cmpi eq, %arg1, %c0_i32_0 : i32
    %2 = arith.andi %0, %1 : i1
    %3 = arith.extui %2 : i1 to i32
    %c0_i32_1 = arith.constant 0 : i32
    %4 = arith.cmpi ne, %3, %c0_i32_1 : i32
    scf.if %4 {
      %cst_12 = arith.constant 0.000000e+00 : f32
      %19 = vector.broadcast %cst_12 : f32 to vector<8x165xf32>
      %c0_13 = arith.constant 0 : index
      %c0_14 = arith.constant 0 : index
      %20 = vector.load %arg5[%c0_13, %c0_14] : memref<8x165xf32, #tpu.memory_space<vmem>>, vector<8x165xf32>
      tpu.vector_store %arg5[%c0_13, %c0_14], %19 {strides = array<i32>} : memref<8x165xf32, #tpu.memory_space<vmem>>, vector<8x165xf32>,
    } else {
    }
    %c0 = arith.constant 0 : index
    %c0_2 = arith.constant 0 : index
    %5 = vector.load %arg2[%c0, %c0_2] : memref<8x165xf32, #tpu.memory_space<vmem>>, vector<8x165xf32>
    %c0_3 = arith.constant 0 : index
    %c0_4 = arith.constant 0 : index
    %6 = vector.load %arg3[%c0_3, %c0_4] : memref<8x165xf32, #tpu.memory_space<vmem>>, vector<8x165xf32>
    %7 = arith.subf %5, %6 : vector<8x165xf32>
    %8 = arith.mulf %7, %7 : vector<8x165xf32>
    %c0_5 = arith.constant 0 : index
    %c0_6 = arith.constant 0 : index
    %9 = vector.load %arg5[%c0_5, %c0_6] : memref<8x165xf32, #tpu.memory_space<vmem>>, vector<8x165xf32>
    %10 = vector.shape_cast %8 : vector<8x165xf32> to vector<1x8x165xf32>
    %cst = arith.constant dense<0.000000e+00> : vector<8x165xf32>
    %11 = vector.multi_reduction <add>, %10, %cst [0] : vector<1x8x165xf32> to vector<8x165xf32>
    %12 = arith.addf %9, %11 : vector<8x165xf32>
    %c0_7 = arith.constant 0 : index
    %c0_8 = arith.constant 0 : index
    %13 = vector.load %arg5[%c0_7, %c0_8] : memref<8x165xf32, #tpu.memory_space<vmem>>, vector<8x165xf32>
    tpu.vector_store %arg5[%c0_7, %c0_8], %12 {strides = array<i32>} : memref<8x165xf32, #tpu.memory_space<vmem>>, vector<8x165xf32>,
    %c0_i32_9 = arith.constant 0 : i32
    %14 = arith.cmpi eq, %arg0, %c0_i32_9 : i32
    %c0_i32_10 = arith.constant 0 : i32
    %15 = arith.cmpi eq, %arg1, %c0_i32_10 : i32
    %16 = arith.andi %14, %15 : i1
    %17 = arith.extui %16 : i1 to i32
    %c0_i32_11 = arith.constant 0 : i32
    %18 = arith.cmpi ne, %17, %c0_i32_11 : i32
    scf.if %18 {
      %c0_12 = arith.constant 0 : index
      %c0_13 = arith.constant 0 : index
      %19 = vector.load %arg5[%c0_12, %c0_13] : memref<8x165xf32, #tpu.memory_space<vmem>>, vector<8x165xf32>
      %20 = vector.shape_cast %19 : vector<8x165xf32> to vector<1x8x165xf32>
      %cst_14 = arith.constant dense<0.000000e+00> : vector<1xf32>
      %21 = vector.multi_reduction <add>, %20, %cst_14 [1, 2] : vector<1x8x165xf32> to vector<1xf32>
      %22 = vector.shape_cast %21 : vector<1xf32> to vector<1x1x1xf32>
      %23 = vector.extract %22[0, 0, 0] : f32 from vector<1x1x1xf32>
      %24 = vector.broadcast %23 : f32 to vector<8x128xf32>
      %c0_15 = arith.constant 0 : index
      %c0_16 = arith.constant 0 : index
      %25 = vector.load %arg4[%c0_15, %c0_16] : memref<8x128xf32, #tpu.memory_space<vmem>>, vector<8x128xf32>
      tpu.vector_store %arg4[%c0_15, %c0_16], %24 {strides = array<i32>} : memref<8x128xf32, #tpu.memory_space<vmem>>, vector<8x128xf32>,
    } else {
    }
    return
  }
  func.func @transform_0(%arg0: i32, %arg1: i32) -> (i32, i32) {
    %c0_i32 = arith.constant 0 : i32
    return %arg0, %arg1 : i32, i32
  }
  func.func @transform_1(%arg0: i32, %arg1: i32) -> (i32, i32) {
    %c0_i32 = arith.constant 0 : i32
    return %arg0, %arg1 : i32, i32
  }
  func.func @transform_2(%arg0: i32, %arg1: i32) -> (i32, i32) {
    %c0_i32 = arith.constant 0 : i32
    %c0_i32_0 = arith.constant 0 : i32
    %c0_i32_1 = arith.constant 0 : i32
    return %c0_i32, %c0_i32_0 : i32, i32
  }
}

</mosaic_0001>

<bundles_post_ra>
// kernel: tpu_custom_call.1
= control target key start
LH: loop header
LB: loop body
LE: loop exit
PB: predicated region body
PF: predicated region fallthrough
CT: control target
= control target key end

     0   :  { %7 = vsyncpa [#allocation4], 0  ;;  %s195_s0 = inlined_call_operand.hbm [shape: f32[8,165], index: 0, kind: input, shape index: {}]   ;;  %s196_s1 = inlined_call_operand.hbm [shape: f32[8,165], index: 1, kind: input, shape index: {}]   ;;  %s197_s2 = inlined_call_operand.hbm [shape: f32[8,128], index: 2, kind: output, shape index: {}]  }
   0x1   :  { %8 = vsyncpa [#allocation7], 0 }
   0x2   :  { %9 = vsyncpa [#allocation5], 0  ;;  %s167_s9 = smov [#allocation3]   ;;  %s168_s11 = smov [#allocation6]  }
   0x3   :  { %s16_s10 = sshll.u32 %s167_s9, 4  ;;  %s26_s12 = sshll.u32 %s168_s11, 4  ;;  %s17_s10 = int_to_ptr.vmem [resolvable:$true] %s16_s10  ;;  %s27_s12 = int_to_ptr.vmem [resolvable:$true] %s26_s12 }
   0x4   :  { %s109_s13 = scalar_lea.vmem %s17_s10, 256  ;;  %p114_p1 = scmp.lt.s32.totalorder %s17_s10, %s17_s10 }
   0x5   :  { %p110_p0 = scmp.ne.s32.totalorder %s17_s10, %s109_s13  ;;  %p115_p2 = scmp.lt.s32.totalorder %s109_s13, %s109_s13 }
   0x7   :  { %p116_p3 = por %p115_p2, %p114_p1 }
   0x9   :  { %p117_p4 = pnand %p116_p3, %p110_p0 }
   0xb   :  { %120 = shalt.err (!%p117_p4)
}
   0xc   :  { %19 = dma.hbm_to_vmem [thread:$0]  %s195_s0, 256, %s17_s10, [#allocation4]  }
   0xd   :  { %s129_s16 = scalar_lea.vmem %s27_s12, 256  ;;  %p134_p6 = scmp.lt.s32.totalorder %s27_s12, %s27_s12 }
   0xe   :  { %p130_p5 = scmp.ne.s32.totalorder %s27_s12, %s129_s16  ;;  %p135_p7 = scmp.lt.s32.totalorder %s129_s16, %s129_s16 }
  0x10   :  { %p136_p8 = por %p135_p7, %p134_p6 }
  0x12   :  { %p137_p9 = pnand %p136_p8, %p130_p5 }
  0x14   :  { %140 = shalt.err (!%p137_p9)
}
  0x15   :  { %29 = dma.hbm_to_vmem [thread:$0]  %s196_s1, 256, %s27_s12, [#allocation7]  }
  0x16   :  { %161 = dma.done.wait [#allocation4], 256  }
  0x17   :  { %162 = vsyncadd [#allocation4], 4294967040 }
  0x18   :  { %163 = dma.done.wait [#allocation7], 256  }
  0x19   :  { %164 = vsyncadd [#allocation7], 4294967040  ;;  %vm43_vm0 = vcmask 302080   ;;  %v169_v0 = vmov 0.0   ;;  %v45_v1 = vld [vmem:[#allocation3] sm:$0xff]  ;;  %v46_v2 = vld [vmem:[#allocation3 + $0x8] sm:$0xff] }
  0x1a   :  { %44 = vst.msk [vmem:[#allocation2 + $0x8] sm:$0xff] %vm43_vm0, %v169_v0  ;;  %v47_v3 = vld [vmem:[#allocation6] sm:$0xff]  ;;  %v48_v4 = vld [vmem:[#allocation6 + $0x8] sm:$0xff]  ;;  %s170_s0 = smov [#allocation8]  }
  0x1b   :  { %v49_v5 = vsub.f32 %v45_v1, %v47_v3  ;;  %v50_v6 = vsub.f32 %v46_v2, %v48_v4  ;;  %s85_s1 = sshll.u32 %s170_s0, 4  ;;  %s86_s1 = int_to_ptr.vmem [resolvable:$true] %s85_s1 }
  0x1c   :  { %s141_s20 = scalar_lea.vmem %s86_s1, 128  ;;  %p146_p11 = scmp.lt.s32.totalorder %s86_s1, %s86_s1 }
  0x1d   :  { %v51_v7 = vmul.f32 %v49_v5, %v49_v5  ;;  %v52_v9 = vmul.f32 %v50_v6, %v50_v6  ;;  %p142_p10 = scmp.ne.s32.totalorder %s86_s1, %s141_s20  ;;  %p147_p12 = scmp.lt.s32.totalorder %s141_s20, %s141_s20 }
  0x1f   :  { %p148_p13 = por %p147_p12, %p146_p11 }
  0x21   :  { %v54_v8 = vld [vmem:[#allocation2 + $0x8] sm:$0xff]  ;;  %p149_p0 = pnand %p148_p13, %p142_p10 }
  0x22   :  { %v58_v10 = vadd.f32 %v54_v8, %v52_v9 }
  0x24   :  { %61 = vst.msk [vmem:[#allocation2 + $0x8] sm:$0xff] %vm43_vm0, %v58_v10 }
  0x2b   :  { %v65_v11 = vld [vmem:[#allocation2 + $0x8] sm:$0xff] }
  0x2c   :  { %v66_v12 = vsel %vm43_vm0, %v65_v11, 0.0 }
  0x2d   :  { %v67_v13 = vadd.f32 %v66_v12, %v51_v7 }
  0x2f   :  { %68 = vadd.xlane.f32.xlu0 %v67_v13 }
  0xb8   :  { %v69_v14 = vpop.xlane.xlu0 %68 }
  0xb9   :  { %v70_v15 = vrot.slane %v69_v14, 4 }
  0xbb   :  { %v71_v16 = vadd.f32 %v70_v15, %v69_v14 }
  0xbd   :  { %v72_v17 = vrot.slane %v71_v16, 2 }
  0xbf   :  { %v73_v18 = vadd.f32 %v72_v17, %v71_v16 }
  0xc1   :  { %v74_v19 = vrot.slane %v73_v18, 1 }
  0xc3   :  { %v75_v20 = vadd.f32 %v74_v19, %v73_v18 }
  0xc5   :  { %95 = vpush %v75_v20 }
  0xf6   :  { %s96_s19 = spop %95 }
  0xf7   :  { %v77_v21 = vstv %s96_s19 }
  0xf8   :  { %78 = vst [vmem:[#allocation8] sm:$0xff] %v77_v21 }
  0xf9   :  { %152 = shalt.err (!%p149_p0)
}
  0xfa   :  { %88 = dma.vmem_to_hbm [thread:$0]  %s86_s1, 128, %s197_s2, [#allocation5]  }
  0xfb   :  { %165 = dma.done.wait [#allocation5], 128  }
  0xfc   :  { %166 = vsyncadd [#allocation5], 4294967168 }
  0xfd   :  { %92 = vsyncpa [#allocation4], 1 }
  0xfe   :  { %93 = vsyncpa [#allocation7], 1 }
  0xff   :  { %94 = vsyncpa [#allocation5], 1 }

</bundles_post_ra>
